<compile_context>
chip_gen: v6e
topology: v6e:2x2x1
jax: 0.10.0
libtpu: 0.0.40
codegen_flags: <defaults>
</compile_context>

<pallas_src>
import jax
import jax.numpy as jnp
from jax.experimental import pallas as pl
from jax.experimental.pallas import tpu as pltpu

_LANE = 128
_MAX_TILE_BYTES = 2 * 1024 * 1024  # per-tile cap; ~4x with double-buffered in+out


def _copy_kernel(x_ref, o_ref):
    # Pure tiled copy: one vld stream, one vst stream, no cross-lane work.
    o_ref[...] = x_ref[...]


def _pallas_duplicate(x):
    """Materialize a copy of `x` via a tiled, lane-dense Pallas kernel."""
    orig_shape = x.shape
    dtype = x.dtype
    itemsize = jnp.dtype(dtype).itemsize
    # Packed-sublane multiple: 8 for 4-byte, 16 for 2-byte, 32 for 1-byte dtypes.
    sublane = {4: 8, 2: 16, 1: 32}.get(itemsize, 8)

    flat = x.reshape(-1)
    total = flat.size

    # Lane-dense 2-D view: (rows, 128) with rows rounded up to a sublane multiple.
    rows = pl.cdiv(total, _LANE)
    rows = ((rows + sublane - 1) // sublane) * sublane

    # Generation-safe tile: at most ~2 MiB, or the whole extent if smaller.
    max_block_rows = max(sublane, _MAX_TILE_BYTES // (_LANE * itemsize))
    # Keep the block a multiple of the sublane packing.
    max_block_rows = (max_block_rows // sublane) * sublane
    block_rows = min(rows, max_block_rows)

    # Pad so the grid divides evenly (copying the padding is harmless).
    grid_rows = pl.cdiv(rows, block_rows)
    padded_rows = grid_rows * block_rows
    padded_total = padded_rows * _LANE
    if padded_total != total:
        flat = jnp.pad(flat, (0, padded_total - total))
    x2d = flat.reshape(padded_rows, _LANE)

    spec = pl.BlockSpec((block_rows, _LANE), lambda i: (i, 0))
    y2d = pl.pallas_call(
        _copy_kernel,
        out_shape=jax.ShapeDtypeStruct((padded_rows, _LANE), dtype),
        grid=(grid_rows,),
        in_specs=[spec],
        out_specs=spec,
        compiler_params=pltpu.CompilerParams(
            dimension_semantics=("parallel",),
            vmem_limit_bytes=32 * 1024 * 1024,
        ),
    )(x2d)

    y = y2d.reshape(-1)
    if padded_total != total:
        y = y[:total]
    return y.reshape(orig_shape)


def block2_forward(x):
    """Pallas implementation of Block2.forward: returns (x, x).

    First output: the input itself (zero-cost identity, exactly like PyTorch
    returning the same tensor object twice). Second output: produced by the
    tiled lane-dense Pallas copy kernel.
    """
    return x, _pallas_duplicate(x)


if __name__ == "__main__":
    key = jax.random.PRNGKey(0)
    x = jax.random.normal(key, (2, 4, 16, 16), dtype=jnp.float32)

    y1, y2 = block2_forward(x)
    jax.block_until_ready((y1, y2))

    assert y1.shape == x.shape and y2.shape == x.shape
    assert y1.dtype == x.dtype and y2.dtype == x.dtype
    assert jnp.array_equal(y1, x) and jnp.array_equal(y2, x)

    print("KERNEL_OK")
</pallas_src>

<mosaic_0001>
module attributes {stable_mosaic.version = 11 : i64} {
  func.func @_copy_kernel(%arg0: i32, %arg1: memref<16x128xf32, #tpu.memory_space<vmem>>, %arg2: memref<16x128xf32, #tpu.memory_space<vmem>>) attributes {dimension_semantics = [#tpu.dimension_semantics<parallel>], iteration_bounds = array<i64: 1>, scalar_prefetch = 0 : i64, scratch_operands = 0 : i64, tpu.core_type = #tpu.core_type<tc>, window_params = [{transform_indices = @transform_0, window_bounds = array<i64: 16, 128>}, {transform_indices = @transform_1, window_bounds = array<i64: 16, 128>}]} {
    %c0 = arith.constant 0 : index
    %c0_0 = arith.constant 0 : index
    %0 = vector.load %arg1[%c0, %c0_0] : memref<16x128xf32, #tpu.memory_space<vmem>>, vector<16x128xf32>
    %c0_1 = arith.constant 0 : index
    %c0_2 = arith.constant 0 : index
    %1 = vector.load %arg2[%c0_1, %c0_2] : memref<16x128xf32, #tpu.memory_space<vmem>>, vector<16x128xf32>
    tpu.vector_store %arg2[%c0_1, %c0_2], %0 {strides = array<i32>} : memref<16x128xf32, #tpu.memory_space<vmem>>, vector<16x128xf32>,
    return
  }
  func.func @transform_0(%arg0: i32) -> (i32, i32) {
    %c0_i32 = arith.constant 0 : i32
    %c0_i32_0 = arith.constant 0 : i32
    return %arg0, %c0_i32 : i32, i32
  }
  func.func @transform_1(%arg0: i32) -> (i32, i32) {
    %c0_i32 = arith.constant 0 : i32
    %c0_i32_0 = arith.constant 0 : i32
    return %arg0, %c0_i32 : i32, i32
  }
}

</mosaic_0001>

<bundles_post_ra>
// kernel: tpu_custom_call.1
= control target key start
LH: loop header
LB: loop body
LE: loop exit
PB: predicated region body
PF: predicated region fallthrough
CT: control target
= control target key end

     0   :  { %6 = vsyncpa [#allocation3], 0  ;;  %s112_s0 = inlined_call_operand.hbm [shape: f32[16,128], index: 0, kind: input, shape index: {}]   ;;  %s113_s1 = inlined_call_operand.hbm [shape: f32[16,128], index: 1, kind: output, shape index: {}]  }
   0x1   :  { %7 = vsyncpa [#allocation4], 0  ;;  %s92_s6 = smov [#allocation2]  }
   0x2   :  { %s13_s7 = sshll.u32 %s92_s6, 4  ;;  %s14_s7 = int_to_ptr.vmem [resolvable:$true] %s13_s7 }
   0x3   :  { %s56_s8 = scalar_lea.vmem %s14_s7, 256  ;;  %p61_p1 = scmp.lt.s32.totalorder %s14_s7, %s14_s7 }
   0x4   :  { %p57_p0 = scmp.ne.s32.totalorder %s14_s7, %s56_s8  ;;  %p62_p2 = scmp.lt.s32.totalorder %s56_s8, %s56_s8 }
   0x6   :  { %p63_p3 = por %p62_p2, %p61_p1 }
   0x8   :  { %p64_p4 = pnand %p63_p3, %p57_p0 }
   0xa   :  { %67 = shalt.err (!%p64_p4)
}
   0xb   :  { %s93_s9 = smov 128   ;;  %s94_s10 = smov 8  }
   0xc   :  { %19 = dma.hbm_to_vmem [thread:$0]  %s112_s0, 256, %s14_s7, [#allocation3], %s93_s9, %s93_s9, %s94_s10  }
   0xd   :  { %88 = dma.done.wait [#allocation3], 256  }
   0xe   :  { %89 = vsyncadd [#allocation3], 4294967040  ;;  %s95_s13 = smov [#allocation5]   ;;  %v23_v0 = vld [vmem:[#allocation2] sm:$0xff]  ;;  %v24_v1 = vld [vmem:[#allocation2 + $0x8] sm:$0xff] }
   0xf   :  { %s32_s14 = sshll.u32 %s95_s13, 4  ;;  %25 = vst [vmem:[#allocation5] sm:$0xff] %v23_v0  ;;  %26 = vst [vmem:[#allocation5 + $0x8] sm:$0xff] %v24_v1  ;;  %s33_s14 = int_to_ptr.vmem [resolvable:$true] %s32_s14 }
  0x10   :  { %s68_s15 = scalar_lea.vmem %s33_s14, 256  ;;  %p73_p6 = scmp.lt.s32.totalorder %s33_s14, %s33_s14 }
  0x11   :  { %p69_p5 = scmp.ne.s32.totalorder %s33_s14, %s68_s15  ;;  %p74_p7 = scmp.lt.s32.totalorder %s68_s15, %s68_s15 }
  0x13   :  { %p75_p8 = por %p74_p7, %p73_p6 }
  0x15   :  { %p76_p9 = pnand %p75_p8, %p69_p5 }
  0x17   :  { %79 = shalt.err (!%p76_p9)
}
  0x18   :  { %38 = dma.vmem_to_hbm [thread:$0]  %s33_s14, 256, %s113_s1, [#allocation4], %s93_s9, %s93_s9, %s94_s10  }
  0x19   :  { %90 = dma.done.wait [#allocation4], 256  }
  0x1a   :  { %91 = vsyncadd [#allocation4], 4294967040 }
  0x1b   :  { %42 = vsyncpa [#allocation3], 1 }
  0x1c   :  { %43 = vsyncpa [#allocation4], 1 }

</bundles_post_ra>
